<compile_context>
chip_gen: v5e
topology: v5e:2x2
jax: 0.10.0
libtpu: 0.0.40
codegen_flags: <defaults>
</compile_context>

<pallas_src>
import jax
import jax.numpy as jnp
from jax.experimental import pallas as pl
from jax.experimental.pallas import tpu as pltpu

_LANES = 128      # vreg lane width
_SUBLANES = 8     # f32 sublanes per vreg


def _sigmoid_kernel(x_ref, o_ref):
    # Elementwise sigmoid on the whole VMEM-resident tile (VPU + EUP for exp).
    o_ref[...] = jax.nn.sigmoid(x_ref[...])


def sigmoid_pallas(x_nchw: jax.Array) -> jax.Array:
    """Applies sigmoid to an NCHW tensor via a single gridless Pallas kernel."""
    n, c, h, w = x_nchw.shape
    total = n * c * h * w

    # Repack into a lane-dense (rows, 128) slab with rows a multiple of 8 so
    # the data occupies full f32 vregs (unmasked loads/stores).
    rows = pl.cdiv(total, _LANES)
    rows = pl.cdiv(rows, _SUBLANES) * _SUBLANES
    padded = rows * _LANES

    flat = x_nchw.reshape(-1)
    flat = jnp.pad(flat, (0, padded - total))
    x2d = flat.reshape(rows, _LANES)

    out2d = pl.pallas_call(
        _sigmoid_kernel,
        out_shape=jax.ShapeDtypeStruct(x2d.shape, x2d.dtype),
        # Gridless call: whole arrays live in VMEM, single kernel invocation,
        # no grid-loop or double-buffer overhead.
        in_specs=[pl.BlockSpec(memory_space=pltpu.MemorySpace.VMEM)],
        out_specs=pl.BlockSpec(memory_space=pltpu.MemorySpace.VMEM),
    )(x2d)

    return out2d.reshape(-1)[:total].reshape(n, c, h, w)


if __name__ == "__main__":
    key = jax.random.PRNGKey(0)
    # Shape implied by the module's forward: [1, 1344, 1, 1] (NCHW).
    x = jax.random.normal(key, (1, 1344, 1, 1), dtype=jnp.float32)

    y = sigmoid_pallas(x)
    jax.block_until_ready(y)

    # Correctness check against plain JAX reference.
    y_ref = jax.nn.sigmoid(x)
    assert y.shape == x.shape
    assert jnp.allclose(y, y_ref, atol=1e-6, rtol=1e-6)

    print("KERNEL_OK")
</pallas_src>

<mosaic_0001>
module attributes {stable_mosaic.version = 11 : i64} {
  func.func @_sigmoid_kernel(%arg0: memref<16x128xf32, #tpu.memory_space<vmem>>, %arg1: memref<16x128xf32, #tpu.memory_space<vmem>>) attributes {dimension_semantics = [], scalar_prefetch = 0 : i64, scratch_operands = 0 : i64, tpu.core_type = #tpu.core_type<tc>} {
    %c0 = arith.constant 0 : index
    %c0_0 = arith.constant 0 : index
    %0 = vector.load %arg0[%c0, %c0_0] : memref<16x128xf32, #tpu.memory_space<vmem>>, vector<16x128xf32>
    %1 = arith.negf %0 : vector<16x128xf32>
    %2 = math.exp %1 : vector<16x128xf32>
    %cst = arith.constant 1.000000e+00 : f32
    %3 = vector.broadcast %cst : f32 to vector<16x128xf32>
    %4 = arith.addf %3, %2 : vector<16x128xf32>
    %5 = arith.divf %3, %4 : vector<16x128xf32>
    %c0_1 = arith.constant 0 : index
    %c0_2 = arith.constant 0 : index
    %6 = vector.load %arg1[%c0_1, %c0_2] : memref<16x128xf32, #tpu.memory_space<vmem>>, vector<16x128xf32>
    tpu.vector_store %arg1[%c0_1, %c0_2], %5 {strides = array<i32>} : memref<16x128xf32, #tpu.memory_space<vmem>>, vector<16x128xf32>,
    return
  }
}

</mosaic_0001>

<bundles_post_ra>
// kernel: tpu_custom_call.1
= control target key start
LH: loop header
LB: loop body
LE: loop exit
PB: predicated region body
PF: predicated region fallthrough
CT: control target
= control target key end

     0   :  { %6 = vsyncpa [#allocation3], 0  ;;  %s178_s0 = inlined_call_operand.hbm [shape: f32[16,128], index: 0, kind: input, shape index: {}]   ;;  %s179_s1 = inlined_call_operand.hbm [shape: f32[16,128], index: 1, kind: output, shape index: {}]  }
   0x1   :  { %7 = vsyncpa [#allocation4], 0  ;;  %s12_s8 = sshll.u32 %s178_s0, 4  ;;  %s152_s9 = smov [#allocation2]   ;;  %s13_s8 = int_to_ptr.hbm [resolvable:$true] %s12_s8 }
   0x2   :  { %s14_s10 = sshll.u32 %s152_s9, 4  ;;  %s153_s11 = smov 128   ;;  %s15_s10 = int_to_ptr.vmem [resolvable:$true] %s14_s10 }
   0x3   :  { %s154_s12 = smov 8  }
   0x4   :  { %20 = dma.hbm_to_vmem [thread:$0]  %s13_s8, 256, %s15_s10, [#allocation3], %s153_s11, %s153_s11, %s154_s12  }
   0x5   :  { %148 = dma.done.wait [#allocation3], 256  }
   0x6   :  { %149 = vsyncadd [#allocation3], 4294967040  ;;  %v25_v0 = vld [vmem:[#allocation2] sm:$0xff]  ;;  %v26_v1 = vld [vmem:[#allocation2 + $0x8] sm:$0xff]  ;;  %s155_s0 = smov [#allocation5]   ;;  %s73_s16 = sshll.u32 %s179_s1, 4  ;;  %s74_s16 = int_to_ptr.hbm [resolvable:$true] %s73_s16 }
   0x7   :  { %v86_v2 = vmul.f32 -1.442695, %v25_v0  ;;  %v87_v3 = vmul.f32 -1.442695, %v26_v1  ;;  %s71_s13 = sshll.u32 %s155_s0, 4  ;;  %s72_s13 = int_to_ptr.vmem [resolvable:$true] %s71_s13 }
   0x9   :  { %92 = vpow2.f32 %v86_v2 }
   0xa   :  { %94 = vpow2.f32 %v87_v3 }
   0xf   :  { %v93_v4 = vpop.eup %92 }
  0x10   :  { %v95_v5 = vpop.eup %94  ;;  %v33_v6 = vadd.f32 1.0, %v93_v4 }
  0x11   :  { %v34_v7 = vadd.f32 1.0, %v95_v5 }
  0x12   :  { %96 = vrcp.f32 %v33_v6  ;;  %vm40_vm0 = vweird.f32 %v33_v6  ;;  %v46_v11 = vand.u32 2147483648, %v33_v6  ;;  %v44_v14 = vand.u32 2147483647, %v33_v6 }
  0x13   :  { %98 = vrcp.f32 %v34_v7  ;;  %v61_v15 = vand.u32 2147483648, %v34_v7  ;;  %vm55_vm2 = vweird.f32 %v34_v7  ;;  %v59_v17 = vand.u32 2147483647, %v34_v7 }
  0x14   :  { %v47_v19 = vor.u32 1.1754944e-38, %v46_v11  ;;  %vm45_vm5 = vcmp.eq.f32.partialorder %v44_v14, 8.507059e+37 }
  0x15   :  { %v62_v22 = vor.u32 1.1754944e-38, %v61_v15  ;;  %vm60_vm7 = vcmp.eq.f32.partialorder %v59_v17, 8.507059e+37 }
  0x18   :  { %v97_v8 = vpop.eup %96 }
  0x19   :  { %v99_v9 = vpop.eup %98  ;;  %v36_v10 = vmul.f32 %v97_v8, %v33_v6  ;;  %vm41_vm1 = vweird.f32 %v97_v8 }
  0x1a   :  { %v51_v12 = vmul.f32 %v99_v9, %v34_v7  ;;  %vm56_vm3 = vweird.f32 %v99_v9  ;;  %vm42_vm4 = vmor %vm40_vm0, %vm41_vm1 }
  0x1b   :  { %v37_v13 = vsub.f32 1.0, %v36_v10  ;;  %vm57_vm6 = vmor %vm55_vm2, %vm56_vm3 }
  0x1c   :  { %v52_v16 = vsub.f32 1.0, %v51_v12 }
  0x1d   :  { %v38_v18 = vmul.f32 %v97_v8, %v37_v13 }
  0x1e   :  { %v53_v20 = vmul.f32 %v99_v9, %v52_v16 }
  0x1f   :  { %v39_v21 = vadd.f32 %v97_v8, %v38_v18 }
  0x20   :  { %v54_v23 = vadd.f32 %v99_v9, %v53_v20 }
  0x21   :  { %v43_v24 = vsel %vm42_vm4, %v97_v8, %v39_v21 }
  0x22   :  { %v48_v25 = vsel %vm45_vm5, %v47_v19, %v43_v24  ;;  %v58_v26 = vsel %vm57_vm6, %v99_v9, %v54_v23 }
  0x23   :  { %65 = vst [vmem:[#allocation5] sm:$0xff] %v48_v25  ;;  %v63_v27 = vsel %vm60_vm7, %v62_v22, %v58_v26 }
  0x24   :  { %66 = vst [vmem:[#allocation5 + $0x8] sm:$0xff] %v63_v27 }
  0x25   :  { %79 = dma.vmem_to_hbm [thread:$0]  %s72_s13, 256, %s74_s16, [#allocation4], %s153_s11, %s153_s11, %s154_s12  }
  0x26   :  { %150 = dma.done.wait [#allocation4], 256  }
  0x27   :  { %151 = vsyncadd [#allocation4], 4294967040 }
  0x28   :  { %84 = vsyncpa [#allocation3], 1 }
  0x29   :  { %85 = vsyncpa [#allocation4], 1 }

</bundles_post_ra>
